<compile_context>
chip_gen: v6e
topology: v6e:2x2x1
jax: 0.10.0
libtpu: 0.0.40
codegen_flags: <defaults>
</compile_context>

<pallas_src>
import jax
import jax.numpy as jnp
from jax.experimental import pallas as pl
from jax.experimental.pallas import tpu as pltpu


_LANES = 512                 # lane (last) dim of every block: multiple of 128
_MAX_ROWS_PER_TILE = 1024    # 1024 rows * 512 lanes = 0.5M samples / tile


def _round_up(a, b):
    return ((a + b - 1) // b) * b


def _poly_kernel(coef_ref, xy_ref, out_ref):
    # coef_ref : SMEM (6,) f32 -> [c_xx, c_yy, c_xy, c_x, c_y, c_1]
    # xy_ref   : VMEM (2, r_block, 512) f32  (channel 0 = x, channel 1 = y)
    # out_ref  : VMEM (r_block, 512) f32
    xv = xy_ref[0]                       # (r_block, 512), dense
    yv = xy_ref[1]                       # (r_block, 512), dense

    c_xx = coef_ref[0]
    c_yy = coef_ref[1]
    c_xy = coef_ref[2]
    c_x = coef_ref[3]
    c_y = coef_ref[4]
    c_1 = coef_ref[5]

    # Horner-style: ~10 VALU ops per output vreg -> well under the HBM time
    # per 1024 samples on every generation (memory-bound, as intended).
    out_ref[...] = xv * (c_xx * xv + c_xy * yv + c_x) \
                 + (yv * (c_yy * yv + c_y) + c_1)


def polynomial_net_forward(x, W, max_rows_per_tile=_MAX_ROWS_PER_TILE):
    """x: (N, 2) f32, W: (3, 3) f32 -> (N, 1) f32 (== x_exp @ W @ x_exp^T)."""
    assert max_rows_per_tile % 8 == 0
    x = x.astype(jnp.float32)
    W = W.astype(jnp.float32)
    n = x.shape[0]
    c = _LANES

    # Fold (possibly asymmetric) W into the 6 coefficients of the quadratic.
    coeffs = jnp.stack([
        W[0, 0],                 # c_xx
        W[1, 1],                 # c_yy
        W[0, 1] + W[1, 0],       # c_xy
        W[0, 2] + W[2, 0],       # c_x
        W[1, 2] + W[2, 1],       # c_y
        W[2, 2],                 # c_1
    ]).astype(jnp.float32)

    # --- Tile geometry: dense (8k, 512) blocks, minimal tail padding. -------
    rows = _round_up(pl.cdiv(n, c), 8)           # whole 512-lane rows, 8-row granularity
    if rows > max_rows_per_tile:
        r_block = max_rows_per_tile
    elif rows >= 16:
        # Enough work for two blocks: keep >=2 tiles so the "parallel" grid
        # axis can shard across both v7x TensorCores.
        r_block = _round_up(pl.cdiv(rows, 2), 8)
    else:
        r_block = rows
    num_tiles = pl.cdiv(rows, r_block)
    rows_pad = num_tiles * r_block
    n_pad = rows_pad * c

    # --- Wrapper relayout: one fused pad+transpose+reshape pass. ------------
    # (N, 2) -> pad rows -> (2, N_pad) -> (2, R, 512), SoA channel-major.
    # TODO(synk): if the caller can supply SoA (2, N) data upstream, this
    # relayout pass (the only extra HBM traffic) disappears entirely.
    x_pad = jnp.pad(x, ((0, n_pad - n), (0, 0)))
    xy = x_pad.T.reshape(2, rows_pad, c)

    # Double-buffered in + out VMEM need, plus headroom; clamp for v7x (64 MiB).
    vmem_bytes = r_block * c * 4 * 6 + (4 << 20)
    vmem_bytes = min(max(vmem_bytes, 32 << 20), 60 << 20)

    out2d = pl.pallas_call(
        _poly_kernel,
        out_shape=jax.ShapeDtypeStruct((rows_pad, c), jnp.float32),
        grid=(num_tiles,),
        in_specs=[
            # 6 scalar coefficients live in SMEM: no VMEM DMA stream for W.
            pl.BlockSpec(memory_space=pltpu.MemorySpace.SMEM),
            # (2, r_block, 512): full channel dim, sublane dim %8, lane dim %128.
            pl.BlockSpec((2, r_block, c), lambda i: (0, i, 0)),
        ],
        out_specs=pl.BlockSpec((r_block, c), lambda i: (i, 0)),
        compiler_params=pltpu.CompilerParams(
            dimension_semantics=("parallel",),
            vmem_limit_bytes=vmem_bytes,
        ),
    )(coeffs, xy)

    # Dense output slab -> contiguous row-major flatten, trailing slice, (N, 1).
    return out2d.reshape(-1)[:n].reshape(n, 1)


def _reference_forward(x, W):
    n = x.shape[0]
    x_exp = jnp.concatenate([x, jnp.ones((n, 1), x.dtype)], axis=1)
    return jnp.sum((x_exp @ W) * x_exp, axis=-1, keepdims=True)


if __name__ == "__main__":
    key = jax.random.PRNGKey(0)
    k_w, k_x = jax.random.split(key)

    # Deterministic parameter init (matches nn.Parameter(torch.randn(3, 3))).
    W = jax.random.normal(k_w, (3, 3), dtype=jnp.float32)

    # Ragged small batch of 2-D points: exercises padding + dense relayout.
    batch = 1000
    x = jax.random.normal(k_x, (batch, 2), dtype=jnp.float32)

    out = jax.block_until_ready(polynomial_net_forward(x, W))
    ref = _reference_forward(x, W)
    assert out.shape == (batch, 1), out.shape
    assert jnp.allclose(out, ref, atol=1e-5, rtol=1e-5), (out, ref)

    # Second run with a tiny per-tile row budget to exercise the multi-tile
    # (>=2 grid steps, megacore-shardable) path at small scale.
    batch2 = 20000
    x2 = jax.random.normal(jax.random.PRNGKey(1), (batch2, 2), dtype=jnp.float32)
    out2 = jax.block_until_ready(polynomial_net_forward(x2, W, max_rows_per_tile=8))
    ref2 = _reference_forward(x2, W)
    assert out2.shape == (batch2, 1), out2.shape
    assert jnp.allclose(out2, ref2, atol=1e-5, rtol=1e-5)

    print("KERNEL_OK")
</pallas_src>

<mosaic_0001>
module attributes {stable_mosaic.version = 11 : i64} {
  func.func @_poly_kernel(%arg0: i32, %arg1: memref<6xf32, #tpu.memory_space<smem>>, %arg2: memref<2x8x512xf32, #tpu.memory_space<vmem>>, %arg3: memref<8x512xf32, #tpu.memory_space<vmem>>) attributes {dimension_semantics = [#tpu.dimension_semantics<parallel>], iteration_bounds = array<i64: 1>, scalar_prefetch = 0 : i64, scratch_operands = 0 : i64, tpu.core_type = #tpu.core_type<tc>, window_params = [{transform_indices = @transform_0, window_bounds = array<i64: 6>}, {transform_indices = @transform_1, window_bounds = array<i64: 2, 8, 512>}, {transform_indices = @transform_2, window_bounds = array<i64: 8, 512>}]} {
    %c0 = arith.constant 0 : index
    %c0_0 = arith.constant 0 : index
    %c0_1 = arith.constant 0 : index
    %0 = vector.load %arg2[%c0, %c0_0, %c0_1] : memref<2x8x512xf32, #tpu.memory_space<vmem>>, vector<1x8x512xf32>
    %1 = vector.shape_cast %0 : vector<1x8x512xf32> to vector<8x512xf32>
    %c1 = arith.constant 1 : index
    %c0_2 = arith.constant 0 : index
    %c0_3 = arith.constant 0 : index
    %2 = vector.load %arg2[%c1, %c0_2, %c0_3] : memref<2x8x512xf32, #tpu.memory_space<vmem>>, vector<1x8x512xf32>
    %3 = vector.shape_cast %2 : vector<1x8x512xf32> to vector<8x512xf32>
    %c0_4 = arith.constant 0 : index
    %4 = memref.load %arg1[%c0_4] : memref<6xf32, #tpu.memory_space<smem>>
    %c1_5 = arith.constant 1 : index
    %5 = memref.load %arg1[%c1_5] : memref<6xf32, #tpu.memory_space<smem>>
    %c2 = arith.constant 2 : index
    %6 = memref.load %arg1[%c2] : memref<6xf32, #tpu.memory_space<smem>>
    %c3 = arith.constant 3 : index
    %7 = memref.load %arg1[%c3] : memref<6xf32, #tpu.memory_space<smem>>
    %c4 = arith.constant 4 : index
    %8 = memref.load %arg1[%c4] : memref<6xf32, #tpu.memory_space<smem>>
    %c5 = arith.constant 5 : index
    %9 = memref.load %arg1[%c5] : memref<6xf32, #tpu.memory_space<smem>>
    %10 = vector.broadcast %4 : f32 to vector<8x512xf32>
    %11 = arith.mulf %10, %1 : vector<8x512xf32>
    %12 = vector.broadcast %6 : f32 to vector<8x512xf32>
    %13 = arith.mulf %12, %3 : vector<8x512xf32>
    %14 = arith.addf %11, %13 : vector<8x512xf32>
    %15 = vector.broadcast %7 : f32 to vector<8x512xf32>
    %16 = arith.addf %14, %15 : vector<8x512xf32>
    %17 = arith.mulf %1, %16 : vector<8x512xf32>
    %18 = vector.broadcast %5 : f32 to vector<8x512xf32>
    %19 = arith.mulf %18, %3 : vector<8x512xf32>
    %20 = vector.broadcast %8 : f32 to vector<8x512xf32>
    %21 = arith.addf %19, %20 : vector<8x512xf32>
    %22 = arith.mulf %3, %21 : vector<8x512xf32>
    %23 = vector.broadcast %9 : f32 to vector<8x512xf32>
    %24 = arith.addf %22, %23 : vector<8x512xf32>
    %25 = arith.addf %17, %24 : vector<8x512xf32>
    %c0_6 = arith.constant 0 : index
    %c0_7 = arith.constant 0 : index
    %26 = vector.load %arg3[%c0_6, %c0_7] : memref<8x512xf32, #tpu.memory_space<vmem>>, vector<8x512xf32>
    tpu.vector_store %arg3[%c0_6, %c0_7], %25 {strides = array<i32>} : memref<8x512xf32, #tpu.memory_space<vmem>>, vector<8x512xf32>,
    return
  }
  func.func @transform_0(%arg0: i32) -> i32 {
    %c0_i32 = arith.constant 0 : i32
    %c0_i32_0 = arith.constant 0 : i32
    return %c0_i32 : i32
  }
  func.func @transform_1(%arg0: i32) -> (i32, i32, i32) {
    %c0_i32 = arith.constant 0 : i32
    %c0_i32_0 = arith.constant 0 : i32
    %c0_i32_1 = arith.constant 0 : i32
    return %c0_i32, %arg0, %c0_i32_0 : i32, i32, i32
  }
  func.func @transform_2(%arg0: i32) -> (i32, i32) {
    %c0_i32 = arith.constant 0 : i32
    %c0_i32_0 = arith.constant 0 : i32
    return %arg0, %c0_i32 : i32, i32
  }
}

</mosaic_0001>

<bundles_post_ra>
// kernel: tpu_custom_call.1
= control target key start
LH: loop header
LB: loop body
LE: loop exit
PB: predicated region body
PF: predicated region fallthrough
CT: control target
= control target key end

     0   :  { %7 = vsyncpa [#allocation5], 0  ;;  %s211_s0 = inlined_call_operand.hbm [shape: f32[6], index: 0, kind: input, shape index: {}]   ;;  %s212_s1 = inlined_call_operand.hbm [shape: f32[2,8,512], index: 1, kind: input, shape index: {}]   ;;  %s213_s2 = inlined_call_operand.hbm [shape: f32[8,512], index: 2, kind: output, shape index: {}]  }
   0x1   :  { %8 = vsyncpa [#allocation3], 0 }
   0x2   :  { %9 = vsyncpa [#allocation4], 0  ;;  %s182_s9 = smov [#allocation2]   ;;  %s183_s12 = smov [#allocation6]  }
   0x3   :  { %17 = dma.hbm_to_smem %s211_s0, 16, %s182_s9, [#allocation5]  }
   0x4   :  { %s23_s13 = sshll.u32 %s183_s12, 4  ;;  %s24_s13 = int_to_ptr.vmem [resolvable:$true] %s23_s13 }
   0x5   :  { %s144_s14 = scalar_lea.vmem %s24_s13, 1024  ;;  %p149_p1 = scmp.lt.s32.totalorder %s24_s13, %s24_s13 }
   0x6   :  { %p145_p0 = scmp.ne.s32.totalorder %s24_s13, %s144_s14  ;;  %p150_p2 = scmp.lt.s32.totalorder %s144_s14, %s144_s14 }
   0x8   :  { %p151_p3 = por %p150_p2, %p149_p1 }
   0xa   :  { %p152_p4 = pnand %p151_p3, %p145_p0 }
   0xc   :  { %155 = shalt.err (!%p152_p4)
}
   0xd   :  { %s184_s15 = smov 512   ;;  %s185_s16 = smov 32  }
   0xe   :  { %29 = dma.hbm_to_vmem [thread:$0]  %s212_s1, 1024, %s24_s13, [#allocation3], %s184_s15, %s184_s15, %s185_s16  }
   0xf   :  { %176 = dma.done.wait [#allocation5], 16  }
  0x10   :  { %177 = vsyncadd [#allocation5], 4294967280 }
  0x11   :  { %178 = dma.done.wait [#allocation3], 1024  }
  0x12   :  { %179 = vsyncadd [#allocation3], 4294966272 }
  0x13   :  { %36 = sfence }
  0x14   :  { %s46_s0 = sld [smem:[#allocation2]]  ;;  %v37_v0 = vld [vmem:[#allocation6] sm:$0xff]  ;;  %v38_v1 = vld [vmem:[#allocation6 + $0x8] sm:$0xff]  ;;  %v39_v2 = vld [vmem:[#allocation6 + $0x10] sm:$0xff]  ;;  %s186_s1 = smov [#allocation7]  }
  0x15   :  { %s118_s19 = sld [smem:[#allocation2 + $0x1]]  ;;  %v42_v3 = vld [vmem:[#allocation6 + $0x20] sm:$0xff]  ;;  %v43_v4 = vld [vmem:[#allocation6 + $0x28] sm:$0xff]  ;;  %v44_v5 = vld [vmem:[#allocation6 + $0x30] sm:$0xff]  ;;  %s108_s24 = sshll.u32 %s186_s1, 4  ;;  %s109_s24 = int_to_ptr.vmem [resolvable:$true] %s108_s24 }
  0x16   :  { %s119_s20 = sld [smem:[#allocation2 + $0x2]]  ;;  %v40_v11 = vld [vmem:[#allocation6 + $0x18] sm:$0xff]  ;;  %s156_s25 = scalar_lea.vmem %s109_s24, 512 }
  0x17   :  { %s120_s21 = sld [smem:[#allocation2 + $0x3]]  ;;  %v45_v12 = vld [vmem:[#allocation6 + $0x38] sm:$0xff]  ;;  %p157_p5 = scmp.ne.s32.totalorder %s109_s24, %s156_s25 }
  0x18   :  { %s121_s22 = sld [smem:[#allocation2 + $0x4]]  ;;  %p161_p6 = scmp.lt.s32.totalorder %s109_s24, %s109_s24 }
  0x19   :  { %s122_s23 = sld [smem:[#allocation2 + $0x5]]  ;;  %p162_p7 = scmp.lt.s32.totalorder %s156_s25, %s156_s25 }
  0x1a   :  { %v52_v6 = vstv %s46_s0 }
  0x1b   :  { %v53_v7 = vmul.f32 %v52_v6, %v37_v0  ;;  %v75_v8 = vstv %s118_s19  ;;  %v54_v9 = vmul.f32 %v52_v6, %v38_v1  ;;  %v55_v10 = vmul.f32 %v52_v6, %v39_v2  ;;  %p163_p8 = por %p162_p7, %p161_p6 }
  0x1c   :  { %v57_v13 = vstv %s119_s20  ;;  %v76_v14 = vmul.f32 %v75_v8, %v42_v3  ;;  %v77_v15 = vmul.f32 %v75_v8, %v43_v4  ;;  %v78_v16 = vmul.f32 %v75_v8, %v44_v5 }
  0x1d   :  { %v58_v17 = vmul.f32 %v57_v13, %v42_v3  ;;  %v66_v18 = vstv %s120_s21  ;;  %v59_v19 = vmul.f32 %v57_v13, %v43_v4  ;;  %v60_v20 = vmul.f32 %v57_v13, %v44_v5  ;;  %p164_p9 = pnand %p163_p8, %p157_p5 }
  0x1e   :  { %v80_v21 = vstv %s121_s22  ;;  %v56_v22 = vmul.f32 %v52_v6, %v40_v11  ;;  %v61_v23 = vmul.f32 %v57_v13, %v45_v12  ;;  %v79_v24 = vmul.f32 %v75_v8, %v45_v12 }
  0x1f   :  { %v62_v25 = vadd.f32 %v58_v17, %v53_v7  ;;  %v81_v26 = vadd.f32 %v80_v21, %v76_v14  ;;  %v89_v27 = vstv %s122_s23  ;;  %v63_v28 = vadd.f32 %v59_v19, %v54_v9 }
  0x20   :  { %v82_v29 = vadd.f32 %v80_v21, %v77_v15  ;;  %v64_v30 = vadd.f32 %v60_v20, %v55_v10  ;;  %v83_v31 = vadd.f32 %v80_v21, %v78_v16  ;;  %v65_v32 = vadd.f32 %v61_v23, %v56_v22 }
  0x21   :  { %v67_v33 = vadd.f32 %v66_v18, %v62_v25  ;;  %v85_v34 = vmul.f32 %v81_v26, %v42_v3  ;;  %v68_v35 = vadd.f32 %v66_v18, %v63_v28  ;;  %v84_v36 = vadd.f32 %v80_v21, %v79_v24 }
  0x22   :  { %v86_v37 = vmul.f32 %v82_v29, %v43_v4  ;;  %v69_v38 = vadd.f32 %v66_v18, %v64_v30  ;;  %v87_v39 = vmul.f32 %v83_v31, %v44_v5  ;;  %v70_v40 = vadd.f32 %v66_v18, %v65_v32 }
  0x23   :  { %v71_v41 = vmul.f32 %v67_v33, %v37_v0  ;;  %v90_v42 = vadd.f32 %v89_v27, %v85_v34  ;;  %v72_v43 = vmul.f32 %v68_v35, %v38_v1  ;;  %v88_v44 = vmul.f32 %v84_v36, %v45_v12 }
  0x24   :  { %v91_v45 = vadd.f32 %v89_v27, %v86_v37  ;;  %v73_v46 = vmul.f32 %v69_v38, %v39_v2  ;;  %v92_v47 = vadd.f32 %v89_v27, %v87_v39  ;;  %v74_v48 = vmul.f32 %v70_v40, %v40_v11 }
  0x25   :  { %v94_v49 = vadd.f32 %v90_v42, %v71_v41  ;;  %v93_v50 = vadd.f32 %v89_v27, %v88_v44 }
  0x26   :  { %v95_v51 = vadd.f32 %v91_v45, %v72_v43  ;;  %v96_v52 = vadd.f32 %v92_v47, %v73_v46 }
  0x27   :  { %98 = vst [vmem:[#allocation7] sm:$0xff] %v94_v49  ;;  %v97_v53 = vadd.f32 %v93_v50, %v74_v48 }
  0x28   :  { %99 = vst [vmem:[#allocation7 + $0x8] sm:$0xff] %v95_v51  ;;  %100 = vst [vmem:[#allocation7 + $0x10] sm:$0xff] %v96_v52 }
  0x29   :  { %101 = vst [vmem:[#allocation7 + $0x18] sm:$0xff] %v97_v53 }
  0x2a   :  { %167 = shalt.err (!%p164_p9)
}
  0x2b   :  { %111 = dma.vmem_to_hbm [thread:$0]  %s109_s24, 512, %s213_s2, [#allocation4]  }
  0x2c   :  { %180 = dma.done.wait [#allocation4], 512  }
  0x2d   :  { %181 = vsyncadd [#allocation4], 4294966784 }
  0x2e   :  { %115 = vsyncpa [#allocation3], 1 }
  0x2f   :  { %116 = vsyncpa [#allocation4], 1 }
  0x30   :  { %117 = vsyncpa [#allocation5], 1 }

</bundles_post_ra>
